<compile_context>
chip_gen: v7x
topology: tpu7x:2x2x1
jax: 0.10.0
libtpu: 0.0.40
codegen_flags: <defaults>
</compile_context>

<pallas_src>
import jax
import jax.numpy as jnp
from jax.experimental import pallas as pl
from jax.experimental.pallas import tpu as pltpu


def _round_up(x: int, m: int) -> int:
    return ((x + m - 1) // m) * m


def patch_embed_kernel(x_ref, w_ref, b_ref, o_ref):
    # x_ref: (TM, P_pad)  w_ref: (P_pad, D_pad)  b_ref: (1, D_pad)  o_ref: (TM, D_pad)
    y = jnp.dot(x_ref[...], w_ref[...], preferred_element_type=jnp.float32)
    o_ref[...] = (y + b_ref[...]).astype(o_ref.dtype)


def patch_embedding(x, weight, bias, *, tm_max=1024):
    """x: (B, N, P, 1) f32; weight: (D, P) (PyTorch Linear layout); bias: (D,)."""
    B, N, P, _ = x.shape
    D = weight.shape[0]
    M = B * N

    P_pad = _round_up(P, 8)      # sublane-aligned contraction dim (do NOT tile K)
    D_pad = _round_up(D, 128)    # lane-dense output stores

    # Glue: squeeze trailing dim + flatten batch/seq (pure reshape, layout-free).
    x2d = x.reshape(M, P)
    if P_pad != P:
        x2d = jnp.pad(x2d, ((0, 0), (0, P_pad - P)))

    # M tile: as large as reasonable (<= tm_max), multiple of 8 sublanes.
    TM = min(tm_max, _round_up(M, 8))
    M_pad = _round_up(M, TM)
    if M_pad != M:
        x2d = jnp.pad(x2d, ((0, M_pad - M), (0, 0)))

    w_t = weight.T  # (P, D)
    if P_pad != P or D_pad != D:
        w_t = jnp.pad(w_t, ((0, P_pad - P), (0, D_pad - D)))
    b2d = bias.reshape(1, D)
    if D_pad != D:
        b2d = jnp.pad(b2d, ((0, 0), (0, D_pad - D)))

    grid = (M_pad // TM,)
    vmem = pltpu.MemorySpace.VMEM

    out2d = pl.pallas_call(
        patch_embed_kernel,
        out_shape=jax.ShapeDtypeStruct((M_pad, D_pad), jnp.float32),
        grid=grid,
        in_specs=[
            pl.BlockSpec((TM, P_pad), lambda i: (i, 0), memory_space=vmem),
            pl.BlockSpec((P_pad, D_pad), lambda i: (0, 0), memory_space=vmem),
            pl.BlockSpec((1, D_pad), lambda i: (0, 0), memory_space=vmem),
        ],
        out_specs=pl.BlockSpec((TM, D_pad), lambda i: (i, 0), memory_space=vmem),
        compiler_params=pltpu.CompilerParams(
            dimension_semantics=("parallel",),
        ),
        cost_estimate=pl.CostEstimate(
            flops=2 * M * P * D,
            transcendentals=0,
            bytes_accessed=4 * (M * P + P * D + M * D + D),
        ),
    )(x2d, w_t, b2d)

    return out2d[:M, :D].reshape(B, N, D)


if __name__ == "__main__":
    # Small shapes consistent with the module's forward.
    B, N, P, D = 2, 8, 16, 32   # batch, num_patches, patch_pixels, d_model

    key = jax.random.PRNGKey(0)
    kx, kw, kb = jax.random.split(key, 3)

    x = jax.random.normal(kx, (B, N, P, 1), dtype=jnp.float32)

    # Deterministic parameter init (mimics nn.Linear uniform(-1/sqrt(P), 1/sqrt(P))).
    bound = 1.0 / (P ** 0.5)
    weight = jax.random.uniform(kw, (D, P), minval=-bound, maxval=bound,
                                dtype=jnp.float32)
    bias = jax.random.uniform(kb, (D,), minval=-bound, maxval=bound,
                              dtype=jnp.float32)

    out = patch_embedding(x, weight, bias)
    out = jax.block_until_ready(out)

    # Reference check in plain JAX (same math as PyTorch Linear).
    ref = jnp.einsum("bnp,dp->bnd", x[..., 0], weight) + bias
    assert out.shape == (B, N, D)
    assert jnp.allclose(out, ref, atol=1e-5, rtol=1e-5)

    print("KERNEL_OK")
</pallas_src>

<mosaic_0001>
module attributes {stable_mosaic.version = 11 : i64} {
  func.func @patch_embed_kernel(%arg0: i32, %arg1: memref<16x16xf32, #tpu.memory_space<vmem>>, %arg2: memref<16x128xf32, #tpu.memory_space<vmem>>, %arg3: memref<1x128xf32, #tpu.memory_space<vmem>>, %arg4: memref<16x128xf32, #tpu.memory_space<vmem>>) attributes {dimension_semantics = [#tpu.dimension_semantics<parallel>], iteration_bounds = array<i64: 1>, scalar_prefetch = 0 : i64, scratch_operands = 0 : i64, tpu.core_type = #tpu.core_type<tc>, window_params = [{transform_indices = @transform_0, window_bounds = array<i64: 16, 16>}, {pipeline_mode = #tpu.pipeline_mode<synchronous>, transform_indices = @transform_1, window_bounds = array<i64: 16, 128>}, {pipeline_mode = #tpu.pipeline_mode<synchronous>, transform_indices = @transform_2, window_bounds = array<i64: 1, 128>}, {transform_indices = @transform_3, window_bounds = array<i64: 16, 128>}]} {
    %c0 = arith.constant 0 : index
    %c0_0 = arith.constant 0 : index
    %0 = vector.load %arg1[%c0, %c0_0] : memref<16x16xf32, #tpu.memory_space<vmem>>, vector<16x16xf32>
    %c0_1 = arith.constant 0 : index
    %c0_2 = arith.constant 0 : index
    %1 = vector.load %arg2[%c0_1, %c0_2] : memref<16x128xf32, #tpu.memory_space<vmem>>, vector<16x128xf32>
    %cst = arith.constant dense<0.000000e+00> : vector<16x128xf32>
    %2 = tpu.matmul %0, %1, %cst {dimension_numbers = #tpu.dot_dimension_numbers<[1], [0], [0], [1], [0, 0, 1, 1], [], []>} : vector<16x16xf32>, vector<16x128xf32>, vector<16x128xf32> -> vector<16x128xf32>
    %c0_3 = arith.constant 0 : index
    %c0_4 = arith.constant 0 : index
    %3 = vector.load %arg3[%c0_3, %c0_4] : memref<1x128xf32, #tpu.memory_space<vmem>>, vector<1x128xf32>
    %4 = vector.broadcast %3 : vector<1x128xf32> to vector<16x128xf32>
    %5 = arith.addf %2, %4 : vector<16x128xf32>
    %c0_5 = arith.constant 0 : index
    %c0_6 = arith.constant 0 : index
    %6 = vector.load %arg4[%c0_5, %c0_6] : memref<16x128xf32, #tpu.memory_space<vmem>>, vector<16x128xf32>
    tpu.vector_store %arg4[%c0_5, %c0_6], %5 {strides = array<i32>} : memref<16x128xf32, #tpu.memory_space<vmem>>, vector<16x128xf32>,
    return
  }
  func.func @transform_0(%arg0: i32) -> (i32, i32) {
    %c0_i32 = arith.constant 0 : i32
    %c0_i32_0 = arith.constant 0 : i32
    return %arg0, %c0_i32 : i32, i32
  }
  func.func @transform_1(%arg0: i32) -> (i32, i32) {
    %c0_i32 = arith.constant 0 : i32
    %c0_i32_0 = arith.constant 0 : i32
    %c0_i32_1 = arith.constant 0 : i32
    return %c0_i32, %c0_i32_0 : i32, i32
  }
  func.func @transform_2(%arg0: i32) -> (i32, i32) {
    %c0_i32 = arith.constant 0 : i32
    %c0_i32_0 = arith.constant 0 : i32
    %c0_i32_1 = arith.constant 0 : i32
    return %c0_i32, %c0_i32_0 : i32, i32
  }
  func.func @transform_3(%arg0: i32) -> (i32, i32) {
    %c0_i32 = arith.constant 0 : i32
    %c0_i32_0 = arith.constant 0 : i32
    return %arg0, %c0_i32 : i32, i32
  }
}

</mosaic_0001>

<bundles_post_ra>
// kernel: tpu_custom_call.1
= control target key start
LH: loop header
LB: loop body
LE: loop exit
PB: predicated region body
PF: predicated region fallthrough
CT: control target
= control target key end

     0   :  { %8 = vsyncpa [#allocation3], 0  ;;  %s324_s0 = inlined_call_operand.hbm [shape: f32[16,16], index: 0, kind: input, shape index: {}]   ;;  %s325_s1 = inlined_call_operand.hbm [shape: f32[16,128], index: 1, kind: input, shape index: {}]   ;;  %s326_s2 = inlined_call_operand.vmem [shape: f32[1,128], index: 2, kind: input, shape index: {}]   ;;  %s327_s3 = inlined_call_operand.hbm [shape: f32[16,128], index: 3, kind: output, shape index: {}]  }
   0x1   :  { %9 = vsyncpa [#allocation6], 0 }
   0x2   :  { %10 = vsyncpa [#allocation4], 0  ;;  %s251_s12 = smov [#allocation2]   ;;  %s179_s16 = scalar_lea.hbm %s324_s0, 256 }
   0x3   :  { %s16_s13 = sshll.u32 %s251_s12, 4  ;;  %p180_p0 = scmp.ne.s32.totalorder %s324_s0, %s179_s16  ;;  %s17_s13 = int_to_ptr.vmem [resolvable:$true] %s16_s13 }
   0x4   :  { %p183_p1 = scmp.lt.u32.totalorder %s179_s16, %s324_s0 }
   0x6   :  { %p185_p2 = pnand %p183_p1, %p180_p0 }
   0x8   :  { %188 = shalt.err (!%p185_p2)
}
   0x9   :  { %s189_s21 = scalar_lea.vmem %s17_s13, 256  ;;  %p194_p4 = scmp.lt.s32.totalorder %s17_s13, %s17_s13 }
   0xa   :  { %p190_p3 = scmp.ne.s32.totalorder %s17_s13, %s189_s21  ;;  %p195_p5 = scmp.lt.s32.totalorder %s189_s21, %s189_s21 }
   0xc   :  { %p196_p6 = por %p195_p5, %p194_p4 }
   0xe   :  { %p197_p7 = pnand %p196_p6, %p190_p3 }
  0x10   :  { %200 = shalt.err (!%p197_p7)
}
  0x11   :  { %s252_s22 = smov 128   ;;  %s253_s23 = smov 8  }
  0x12   :  { %22 = dma.hbm_to_vmem [thread:$0]  %s324_s0, 256, %s17_s13, [#allocation3], %s252_s22, %s252_s22, %s253_s23  }
  0x13   :  { %s254_s26 = smov [#allocation5]   ;;  %s201_s30 = scalar_lea.hbm %s325_s1, 256 }
  0x14   :  { %s28_s27 = sshll.u32 %s254_s26, 4  ;;  %p202_p8 = scmp.ne.s32.totalorder %s325_s1, %s201_s30  ;;  %s29_s27 = int_to_ptr.vmem [resolvable:$true] %s28_s27 }
  0x15   :  { %p205_p9 = scmp.lt.u32.totalorder %s201_s30, %s325_s1 }
  0x17   :  { %p207_p10 = pnand %p205_p9, %p202_p8 }
  0x19   :  { %210 = shalt.err (!%p207_p10)
}
  0x1a   :  { %s211_s8 = scalar_lea.vmem %s29_s27, 256  ;;  %p216_p12 = scmp.lt.s32.totalorder %s29_s27, %s29_s27 }
  0x1b   :  { %p212_p11 = scmp.ne.s32.totalorder %s29_s27, %s211_s8  ;;  %p217_p13 = scmp.lt.s32.totalorder %s211_s8, %s211_s8 }
  0x1d   :  { %p218_p0 = por %p217_p13, %p216_p12 }
  0x1f   :  { %p219_p1 = pnand %p218_p0, %p212_p11 }
  0x21   :  { %222 = shalt.err (!%p219_p1)
}
  0x22   :  { %34 = dma.hbm_to_vmem [thread:$0]  %s325_s1, 256, %s29_s27, [#allocation6], %s252_s22, %s252_s22, %s253_s23  }
  0x23   :  { %245 = dma.done.wait [#allocation3], 256  }
  0x24   :  { %246 = vsyncadd [#allocation3], 4294967040 }
  0x25   :  { %247 = dma.done.wait [#allocation6], 256  }
  0x26   :  { %248 = vsyncadd [#allocation6], 4294967040  ;;  %vm54_vm0 = vcmask 130048   ;;  %v45_v0 = vld [vmem:[#allocation5] sm:$0xff]  ;;  %v46_v1 = vld [vmem:[#allocation5 + $0x8] sm:$0xff]  ;;  %s255_s12 = smov [#allocation7]  }
  0x27   :  { %v43_v2 = vld [vmem:[#allocation2] sm:$0xff]  ;;  %v170_v3 = vpack.c.bf16 %v46_v1, %v45_v0  ;;  %v44_v4 = vld [vmem:[#allocation2 + $0x8] sm:$0xff]  ;;  %s143_s1 = sshll.u32 %s255_s12, 4  ;;  %s144_s1 = int_to_ptr.vmem [resolvable:$true] %s143_s1 }
  0x28   :  { %167 = vmatprep.mubr.msk.f32.mxu0 %vm54_vm0, %v43_v2  ;;  %v156_v5 = vld [vmem:[%s326_s2] ss:$0 sm:$0xff]  ;;  %s223_s13 = scalar_lea.vmem %s144_s1, 256  ;;  %p228_p3 = scmp.lt.s32.totalorder %s144_s1, %s144_s1 }
  0x29   :  { %171 = vmatprep.subr.bf16.mxu0 %v170_v3  ;;  %p224_p2 = scmp.ne.s32.totalorder %s144_s1, %s223_s13  ;;  %p229_p4 = scmp.lt.s32.totalorder %s223_s13, %s223_s13 }
  0x2a   :  { %173 = vmatpush3.bf16.msra.mxu0 %v170_v3 }
  0x2b   :  { %p230_p5 = por %p229_p4, %p228_p3 }
  0x2d   :  { %168 = vmatmul.mubr.msk.f32.vlgmr.msra.gmra.mrb[0].mxu0 %vm54_vm0, %v44_v4  ;;  %p231_p6 = pnand %p230_p5, %p224_p2 }
 0x100   :  { %v169_v6 = vpop.f32.mrb[0].mxu0 }
 0x101   :  { %v133_v7 = vadd.f32 %v169_v6, %v156_v5  ;;  %v127_v8 = vpop.f32.mrb[1].mxu0 }
 0x102   :  { %v128_v9 = vadd.f32 %v156_v5, %v127_v8 }
 0x103   :  { %137 = vst [vmem:[#allocation7 + $0x8] sm:$0xff] %v133_v7 }
 0x104   :  { %136 = vst [vmem:[#allocation7] sm:$0xff] %v128_v9 }
 0x105   :  { %234 = shalt.err (!%p231_p6)
}
 0x106   :  { %s235_s2 = scalar_lea.hbm %s327_s3, 256 }
 0x107   :  { %p236_p7 = scmp.ne.s32.totalorder %s327_s3, %s235_s2  ;;  %p239_p8 = scmp.lt.u32.totalorder %s235_s2, %s327_s3 }
 0x109   :  { %p241_p9 = pnand %p239_p8, %p236_p7 }
 0x10b   :  { %244 = shalt.err (!%p241_p9)
}
 0x10c   :  { %149 = dma.vmem_to_hbm [thread:$0]  %s144_s1, 256, %s327_s3, [#allocation4], %s252_s22, %s252_s22, %s253_s23  }
 0x10d   :  { %249 = dma.done.wait [#allocation4], 256  }
 0x10e   :  { %250 = vsyncadd [#allocation4], 4294967040 }
 0x10f   :  { %153 = vsyncpa [#allocation3], 1 }
 0x110   :  { %154 = vsyncpa [#allocation6], 1 }
 0x111   :  { %155 = vsyncpa [#allocation4], 1 }

</bundles_post_ra>
